<compile_context>
chip_gen: v7x
topology: tpu7x:2x2x1
jax: 0.10.0
libtpu: 0.0.40
codegen_flags: <defaults>
</compile_context>

<pallas_src>
import functools

import jax
import jax.numpy as jnp
from jax.experimental import pallas as pl
from jax.experimental.pallas import tpu as pltpu


def _contrastive_loss_kernel(x_ref, y_ref, lab_ref, out_ref, *, margin, batch,
                             block_rows, chunk):
    i = pl.program_id(0)
    tb, d = x_ref.shape

    # ---- single pass over D in lane chunks: load/cast each vreg once -------
    dot = jnp.zeros((tb, 1), jnp.float32)   # sum(x*y)
    nxx = jnp.zeros((tb, 1), jnp.float32)   # ||x||^2
    nyy = jnp.zeros((tb, 1), jnp.float32)   # ||y||^2
    for start in range(0, d, chunk):
        stop = min(start + chunk, d)
        xc = x_ref[:, start:stop].astype(jnp.float32)   # (tb, <=chunk) f32
        yc = y_ref[:, start:stop].astype(jnp.float32)
        dot = dot + jnp.sum(xc * yc, axis=-1, keepdims=True)
        nxx = nxx + jnp.sum(xc * xc, axis=-1, keepdims=True)
        nyy = nyy + jnp.sum(yc * yc, axis=-1, keepdims=True)

    # cosine_similarity: norm-then-multiply (matches reference, no overflow of
    # the squared-norm product); eps = 1e-8 on ||x||*||y||.
    norm_prod = jnp.sqrt(nxx) * jnp.sqrt(nyy)
    sim = dot / jnp.maximum(norm_prod, 1e-8)             # (tb, 1)

    lab = lab_ref[...].astype(jnp.float32)                # (tb, 1)
    pos = jnp.square(sim)                                  # (1 - label) branch
    neg = jnp.square(jnp.maximum(margin - sim, 0.0))       # clamp(margin-sim,0)^2
    per_row = (1.0 - lab) * pos + lab * neg                # (tb, 1)

    def _tile_sum(rows):
        s = jnp.sum(rows, axis=0, keepdims=True)           # (1, 1)
        return jnp.broadcast_to(s[None], (1, 1, 128))      # lane-dense store

    out_ref[...] = _tile_sum(per_row)

    # Only the last (partial) tile contains padded rows; gate the mask there
    # and skip it entirely (static branch) when B is a multiple of the tile.
    if batch % block_rows != 0:
        @pl.when(i == pl.num_programs(0) - 1)
        def _():
            row = i * block_rows + jax.lax.broadcasted_iota(
                jnp.int32, per_row.shape, 0)
            masked = jnp.where(row < batch, per_row, 0.0)
            out_ref[...] = _tile_sum(masked)


def _choose_block_rows(batch, dim, itemsize):
    """Row tile size from a VMEM budget + a minimum-grid-steps cap."""
    # Double-buffered x + y input blocks: 2 arrays * 2 buffers * dim * itemsize
    # bytes per row.  ~32 MiB of inputs + O(tb*chunk) f32 working set from the
    # chunked reduction stays well under the 48 MiB scoped limit (and v7x's
    # 64 MiB physical VMEM).
    budget = 32 * 1024 * 1024
    per_row_bytes = 2 * 2 * dim * itemsize
    tb = budget // max(per_row_bytes, 1)
    tb = min(int(tb), 1024)
    # Keep >= ~4 grid steps so the "parallel" axis can shard across v7x's two
    # TensorCores even when B would otherwise fit in a single tile.
    tb = min(tb, -(-batch // 4))
    tb = max(8, (tb // 8) * 8)                # sublane multiple
    b_pad = ((batch + 7) // 8) * 8
    return min(tb, b_pad)


def contrastive_loss(x, y, labels, margin=1.0, block_rows=None, chunk=512):
    """x: (B, D), y: (B, D), labels: (B,) -> scalar f32 loss."""
    B, D = x.shape
    labels2d = labels.reshape(B, 1).astype(jnp.float32)

    if block_rows is None:
        tb = _choose_block_rows(B, D, jnp.dtype(x.dtype).itemsize)
    else:
        tb = block_rows
    n_tiles = pl.cdiv(B, tb)
    chunk = max(1, min(chunk, D))

    kernel = functools.partial(
        _contrastive_loss_kernel,
        margin=float(margin), batch=B, block_rows=tb, chunk=chunk)

    per_tile = pl.pallas_call(
        kernel,
        # One lane-dense (1, 1, 128) partial-sum row per grid step.
        out_shape=jax.ShapeDtypeStruct((n_tiles, 1, 128), jnp.float32),
        grid_spec=pltpu.PrefetchScalarGridSpec(
            num_scalar_prefetch=0,
            grid=(n_tiles,),
            in_specs=[
                pl.BlockSpec((tb, D), lambda i: (i, 0)),
                pl.BlockSpec((tb, D), lambda i: (i, 0)),
                pl.BlockSpec((tb, 1), lambda i: (i, 0)),
            ],
            out_specs=pl.BlockSpec((1, 1, 128), lambda i: (i, 0, 0)),
        ),
        compiler_params=pltpu.CompilerParams(
            dimension_semantics=("parallel",),
            # Safe on every generation: > v5e's 16 MiB scoped default,
            # < v7x's 64 MiB physical VMEM.
            vmem_limit_bytes=48 * 1024 * 1024,
        ),
    )(x, y, labels2d)

    # Each grid step already produced its (masked) partial sum; reduce the
    # n_tiles scalars and divide by the true batch size.
    return jnp.sum(per_tile[:, 0, 0]) / jnp.float32(B)


def _reference(x, y, labels, margin=1.0):
    xf = x.astype(jnp.float32)
    yf = y.astype(jnp.float32)
    dot = jnp.sum(xf * yf, axis=-1)
    nx = jnp.linalg.norm(xf, axis=-1)
    ny = jnp.linalg.norm(yf, axis=-1)
    sim = dot / jnp.maximum(nx * ny, 1e-8)
    lab = labels.astype(jnp.float32)
    return jnp.mean((1.0 - lab) * sim**2
                    + lab * jnp.maximum(margin - sim, 0.0) ** 2)


if __name__ == "__main__":
    key = jax.random.PRNGKey(0)
    kx, ky, kl, kx2, ky2, kl2 = jax.random.split(key, 6)

    # Case 1: small, single tile, f32, D fits in one chunk, B % tb == 0 so the
    # tail-mask path is statically skipped.
    B, D = 8, 32
    x = jax.random.normal(kx, (B, D), dtype=jnp.float32)
    y = jax.random.normal(ky, (B, D), dtype=jnp.float32)
    labels = jax.random.bernoulli(kl, 0.5, (B,)).astype(jnp.float32)

    loss = contrastive_loss(x, y, labels, margin=1.0)
    jax.block_until_ready(loss)
    ref = _reference(x, y, labels, margin=1.0)
    assert jnp.allclose(loss, ref, atol=1e-5, rtol=1e-5), (loss, ref)

    # Case 2: bf16 inputs, multi-tile "parallel" grid, ragged tail
    # (B % tb != 0), and a multi-chunk D reduction (chunk=128 over D=256).
    B2, D2 = 20, 256
    x2 = jax.random.normal(kx2, (B2, D2), dtype=jnp.bfloat16)
    y2 = jax.random.normal(ky2, (B2, D2), dtype=jnp.bfloat16)
    labels2 = jax.random.bernoulli(kl2, 0.5, (B2,)).astype(jnp.float32)

    loss2 = contrastive_loss(x2, y2, labels2, margin=1.0,
                             block_rows=8, chunk=128)
    jax.block_until_ready(loss2)
    ref2 = _reference(x2, y2, labels2, margin=1.0)
    assert jnp.allclose(loss2, ref2, atol=1e-4, rtol=1e-4), (loss2, ref2)

    print("KERNEL_OK")
</pallas_src>

<mosaic_0001>
module attributes {stable_mosaic.version = 11 : i64} {
  func.func @_contrastive_loss_kernel(%arg0: i32, %arg1: memref<8x32xf32, #tpu.memory_space<vmem>>, %arg2: memref<8x32xf32, #tpu.memory_space<vmem>>, %arg3: memref<8x1xf32, #tpu.memory_space<vmem>>, %arg4: memref<1x1x128xf32, #tpu.memory_space<vmem>>) attributes {dimension_semantics = [#tpu.dimension_semantics<parallel>], iteration_bounds = array<i64: 1>, scalar_prefetch = 0 : i64, scratch_operands = 0 : i64, tpu.core_type = #tpu.core_type<tc>, window_params = [{transform_indices = @transform_0, window_bounds = array<i64: 8, 32>}, {transform_indices = @transform_1, window_bounds = array<i64: 8, 32>}, {transform_indices = @transform_2, window_bounds = array<i64: 8, 1>}, {transform_indices = @transform_3, window_bounds = array<i64: 1, 1, 128>}]} {
    %cst = arith.constant 0.000000e+00 : f32
    %0 = vector.broadcast %cst : f32 to vector<8x1xf32>
    %cst_0 = arith.constant 0.000000e+00 : f32
    %1 = vector.broadcast %cst_0 : f32 to vector<8x1xf32>
    %cst_1 = arith.constant 0.000000e+00 : f32
    %2 = vector.broadcast %cst_1 : f32 to vector<8x1xf32>
    %c0 = arith.constant 0 : index
    %c0_2 = arith.constant 0 : index
    %3 = vector.load %arg1[%c0, %c0_2] : memref<8x32xf32, #tpu.memory_space<vmem>>, vector<8x32xf32>
    %c0_3 = arith.constant 0 : index
    %c0_4 = arith.constant 0 : index
    %4 = vector.load %arg2[%c0_3, %c0_4] : memref<8x32xf32, #tpu.memory_space<vmem>>, vector<8x32xf32>
    %5 = arith.mulf %3, %4 : vector<8x32xf32>
    %cst_5 = arith.constant dense<0.000000e+00> : vector<8xf32>
    %6 = vector.multi_reduction <add>, %5, %cst_5 [1] : vector<8x32xf32> to vector<8xf32>
    %7 = vector.shape_cast %6 : vector<8xf32> to vector<8x1xf32>
    %8 = arith.addf %0, %7 : vector<8x1xf32>
    %9 = arith.mulf %3, %3 : vector<8x32xf32>
    %cst_6 = arith.constant dense<0.000000e+00> : vector<8xf32>
    %10 = vector.multi_reduction <add>, %9, %cst_6 [1] : vector<8x32xf32> to vector<8xf32>
    %11 = vector.shape_cast %10 : vector<8xf32> to vector<8x1xf32>
    %12 = arith.addf %1, %11 : vector<8x1xf32>
    %13 = arith.mulf %4, %4 : vector<8x32xf32>
    %cst_7 = arith.constant dense<0.000000e+00> : vector<8xf32>
    %14 = vector.multi_reduction <add>, %13, %cst_7 [1] : vector<8x32xf32> to vector<8xf32>
    %15 = vector.shape_cast %14 : vector<8xf32> to vector<8x1xf32>
    %16 = arith.addf %2, %15 : vector<8x1xf32>
    %17 = math.sqrt %12 : vector<8x1xf32>
    %18 = math.sqrt %16 : vector<8x1xf32>
    %19 = arith.mulf %17, %18 : vector<8x1xf32>
    %cst_8 = arith.constant 9.99999993E-9 : f32
    %20 = vector.broadcast %cst_8 : f32 to vector<8x1xf32>
    %21 = arith.maximumf %19, %20 : vector<8x1xf32>
    %22 = arith.divf %8, %21 : vector<8x1xf32>
    %c0_9 = arith.constant 0 : index
    %c0_10 = arith.constant 0 : index
    %23 = vector.load %arg3[%c0_9, %c0_10] : memref<8x1xf32, #tpu.memory_space<vmem>>, vector<8x1xf32>
    %24 = arith.mulf %22, %22 : vector<8x1xf32>
    %cst_11 = arith.constant 1.000000e+00 : f32
    %25 = vector.broadcast %cst_11 : f32 to vector<8x1xf32>
    %26 = arith.subf %25, %22 : vector<8x1xf32>
    %cst_12 = arith.constant 0.000000e+00 : f32
    %27 = vector.broadcast %cst_12 : f32 to vector<8x1xf32>
    %28 = arith.maximumf %26, %27 : vector<8x1xf32>
    %29 = arith.mulf %28, %28 : vector<8x1xf32>
    %cst_13 = arith.constant 1.000000e+00 : f32
    %30 = vector.broadcast %cst_13 : f32 to vector<8x1xf32>
    %31 = arith.subf %30, %23 : vector<8x1xf32>
    %32 = arith.mulf %31, %24 : vector<8x1xf32>
    %33 = arith.mulf %23, %29 : vector<8x1xf32>
    %34 = arith.addf %32, %33 : vector<8x1xf32>
    %cst_14 = arith.constant dense<0.000000e+00> : vector<1xf32>
    %35 = vector.multi_reduction <add>, %34, %cst_14 [0] : vector<8x1xf32> to vector<1xf32>
    %36 = vector.shape_cast %35 : vector<1xf32> to vector<1x1xf32>
    %37 = vector.shape_cast %36 : vector<1x1xf32> to vector<1x1x1xf32>
    %38 = vector.shape_cast %37 : vector<1x1x1xf32> to vector<1x1x1xf32>
    %39 = vector.broadcast %38 : vector<1x1x1xf32> to vector<1x1x128xf32>
    %c0_15 = arith.constant 0 : index
    %c0_16 = arith.constant 0 : index
    %c0_17 = arith.constant 0 : index
    %40 = vector.load %arg4[%c0_15, %c0_16, %c0_17] : memref<1x1x128xf32, #tpu.memory_space<vmem>>, vector<1x1x128xf32>
    tpu.vector_store %arg4[%c0_15, %c0_16, %c0_17], %39 {strides = array<i32>} : memref<1x1x128xf32, #tpu.memory_space<vmem>>, vector<1x1x128xf32>,
    return
  }
  func.func @transform_0(%arg0: i32) -> (i32, i32) {
    %c0_i32 = arith.constant 0 : i32
    %c0_i32_0 = arith.constant 0 : i32
    return %arg0, %c0_i32 : i32, i32
  }
  func.func @transform_1(%arg0: i32) -> (i32, i32) {
    %c0_i32 = arith.constant 0 : i32
    %c0_i32_0 = arith.constant 0 : i32
    return %arg0, %c0_i32 : i32, i32
  }
  func.func @transform_2(%arg0: i32) -> (i32, i32) {
    %c0_i32 = arith.constant 0 : i32
    %c0_i32_0 = arith.constant 0 : i32
    return %arg0, %c0_i32 : i32, i32
  }
  func.func @transform_3(%arg0: i32) -> (i32, i32, i32) {
    %c0_i32 = arith.constant 0 : i32
    %c0_i32_0 = arith.constant 0 : i32
    %c0_i32_1 = arith.constant 0 : i32
    return %arg0, %c0_i32, %c0_i32_0 : i32, i32, i32
  }
}

</mosaic_0001>

<bundles_post_ra>
// kernel: tpu_custom_call.1
= control target key start
LH: loop header
LB: loop body
LE: loop exit
PB: predicated region body
PF: predicated region fallthrough
CT: control target
= control target key end

     0   :  { %8 = vsyncpa [#allocation3], 0  ;;  %s213_s0 = inlined_call_operand.vmem [shape: f32[8,32], index: 0, kind: input, shape index: {}]   ;;  %s214_s1 = inlined_call_operand.hbm [shape: f32[8,32], index: 1, kind: input, shape index: {}]   ;;  %s215_s2 = inlined_call_operand.vmem [shape: f32[8,1], index: 2, kind: input, shape index: {}]   ;;  %s216_s3 = inlined_call_operand.hbm [shape: f32[1,1,128], index: 3, kind: output, shape index: {}]  }
   0x1   :  { %9 = vsyncpa [#allocation4], 0  ;;  %s160_s12 = smov [#allocation2]   ;;  %s112_s16 = scalar_lea.hbm %s214_s1, 128 }
   0x2   :  { %s18_s13 = sshll.u32 %s160_s12, 4  ;;  %p113_p0 = scmp.ne.s32.totalorder %s214_s1, %s112_s16  ;;  %s19_s13 = int_to_ptr.vmem [resolvable:$true] %s18_s13 }
   0x3   :  { %p116_p1 = scmp.lt.u32.totalorder %s112_s16, %s214_s1 }
   0x5   :  { %p118_p2 = pnand %p116_p1, %p113_p0 }
   0x7   :  { %121 = shalt.err (!%p118_p2)
}
   0x8   :  { %s122_s21 = scalar_lea.vmem %s19_s13, 128  ;;  %p127_p4 = scmp.lt.s32.totalorder %s19_s13, %s19_s13 }
   0x9   :  { %p123_p3 = scmp.ne.s32.totalorder %s19_s13, %s122_s21  ;;  %p128_p5 = scmp.lt.s32.totalorder %s122_s21, %s122_s21 }
   0xb   :  { %p129_p6 = por %p128_p5, %p127_p4 }
   0xd   :  { %p130_p7 = pnand %p129_p6, %p123_p3 }
   0xf   :  { %133 = shalt.err (!%p130_p7)
}
  0x10   :  { %21 = dma.hbm_to_vmem [thread:$0]  %s214_s1, 128, %s19_s13, [#allocation3]  }
  0x11   :  { %156 = dma.done.wait [#allocation3], 128  }
  0x12   :  { %157 = vsyncadd [#allocation3], 4294967168  ;;  %v27_v0 = vld [vmem:[%s213_s0] sm:$0xff]  ;;  %vm30_vm0 = vcmask 261120   ;;  %v161_v8 = vmov 0   ;;  %vm72_vm5 = vcmask 7168  }
  0x13   :  { %v28_v1 = vld [vmem:[#allocation2] sm:$0xff]  ;;  %v35_v2 = vmul.f32 %v27_v0, %v27_v0  ;;  %104 = vset.pattern.permute.xlu1 %v161_v8  ;;  %105 = vset.pattern.permute.xlu0 %v161_v8  ;;  %s162_s26 = smov [#allocation5]  }
  0x14   :  { %v40_v3 = vmul.f32 %v28_v1, %v28_v1  ;;  %v29_v4 = vmul.f32 %v28_v1, %v27_v0  ;;  %v63_v26 = vld [vmem:[%s215_s2] sm:$0xff]  ;;  %s92_s27 = sshll.u32 %s162_s26, 4  ;;  %s93_s27 = int_to_ptr.vmem [resolvable:$true] %s92_s27 }
  0x15   :  { %v36_v5 = vsel %vm30_vm0, %v35_v2, 0.0  ;;  %v68_v28 = vsub.f32 1.0, %v63_v26  ;;  %s134_s2 = scalar_lea.vmem %s93_s27, 16  ;;  %s138_s28 = scalar_lea.vmem %s93_s27, 32 }
  0x16   :  { %v31_v6 = vsel %vm30_vm0, %v29_v4, 0.0  ;;  %37 = vadd.xlane.f32.xlu0 %v36_v5  ;;  %v41_v7 = vsel %vm30_vm0, %v40_v3, 0.0  ;;  %p135_p8 = scmp.ne.s32.totalorder %s93_s27, %s134_s2  ;;  %p139_p9 = scmp.lt.s32.totalorder %s93_s27, %s93_s27 }
  0x17   :  { %32 = vadd.xlane.f32.xlu1 %v31_v6  ;;  %p140_p10 = scmp.lt.s32.totalorder %s138_s28, %s134_s2 }
  0x19   :  { %p141_p11 = por %p140_p10, %p139_p9 }
  0x1a   :  { %42 = vadd.xlane.f32.xlu0 %v41_v7 }
  0x1b   :  { %p142_p12 = pnand %p141_p11, %p135_p8 }
  0xa3   :  { %v38_v9 = vpop.xlane.xlu0 %37 }
  0xa4   :  { %106 = vrsqrt.f32 %v38_v9  ;;  %vm47_vm1 = vcmp.eq.f32.partialorder %v38_v9, inf  ;;  %v50_v16 = vand.u32 2147483648, %v38_v9  ;;  %vm49_vm3 = vcmp.eq.f32.partialorder %v38_v9, 0.0  ;;  %v33_v23 = vpop.xlane.xlu1 %32 }
  0xa7   :  { %v43_v10 = vpop.xlane.xlu0 %42 }
  0xa8   :  { %108 = vrsqrt.f32 %v43_v10  ;;  %vm54_vm2 = vcmp.eq.f32.partialorder %v43_v10, inf  ;;  %v57_v17 = vand.u32 2147483648, %v43_v10  ;;  %vm56_vm4 = vcmp.eq.f32.partialorder %v43_v10, 0.0 }
  0xae   :  { %v107_v11 = vpop.eup %106 }
  0xaf   :  { %v46_v12 = vmul.f32 %v107_v11, %v38_v9 }
  0xb1   :  { %v48_v14 = vsel %vm47_vm1, %v38_v9, %v46_v12 }
  0xb2   :  { %v109_v13 = vpop.eup %108  ;;  %v51_v19 = vsel %vm49_vm3, %v50_v16, %v48_v14 }
  0xb3   :  { %v53_v15 = vmul.f32 %v109_v13, %v43_v10 }
  0xb5   :  { %v55_v18 = vsel %vm54_vm2, %v43_v10, %v53_v15 }
  0xb6   :  { %v58_v20 = vsel %vm56_vm4, %v57_v17, %v55_v18 }
  0xb7   :  { %v59_v21 = vmul.f32 %v58_v20, %v51_v19 }
  0xb9   :  { %v60_v22 = vmax.f32 %v59_v21, 1e-08 }
  0xbb   :  { %110 = vrcp.f32 %v60_v22 }
  0xc5   :  { %v111_v24 = vpop.eup %110 }
  0xc6   :  { %v62_v25 = vmul.f32 %v111_v24, %v33_v23 }
  0xc8   :  { %v65_v27 = vsub.f32 1.0, %v62_v25  ;;  %v64_v29 = vmul.f32 %v62_v25, %v62_v25 }
  0xca   :  { %v66_v30 = vmax.f32 %v65_v27, 0.0  ;;  %v69_v32 = vmul.f32 %v68_v28, %v64_v29 }
  0xcc   :  { %v67_v31 = vmul.f32 %v66_v30, %v66_v30 }
  0xce   :  { %v70_v33 = vmul.f32 %v67_v31, %v63_v26 }
  0xd0   :  { %v71_v34 = vadd.f32 %v70_v33, %v69_v32 }
  0xd2   :  { %v73_v35 = vsel %vm72_vm5, %v71_v34, 0.0 }
  0xd3   :  { %v74_v36 = vrot.slane %v73_v35, 4 }
  0xd5   :  { %v75_v37 = vadd.f32 %v74_v36, %v73_v35 }
  0xd7   :  { %v76_v38 = vrot.slane %v75_v37, 2 }
  0xd9   :  { %v77_v39 = vadd.f32 %v76_v38, %v75_v37 }
  0xdb   :  { %v78_v40 = vrot.slane %v77_v39, 1 }
  0xdd   :  { %v79_v41 = vadd.f32 %v78_v40, %v77_v39 }
  0xdf   :  { %82 = vperm.xlu1 %104, %v79_v41  }
 0x15e   :  { %v83_v42 = vpop.permute.xlu1 %82 }
 0x15f   :  { %85 = vst [vmem:[#allocation5] sm:$0x1] %v83_v42 }
 0x160   :  { %145 = shalt.err (!%p142_p12)
}
 0x161   :  { %s146_s4 = scalar_lea.hbm %s216_s3, 16 }
 0x162   :  { %p147_p13 = scmp.ne.s32.totalorder %s216_s3, %s146_s4  ;;  %p150_p0 = scmp.lt.u32.totalorder %s146_s4, %s216_s3 }
 0x164   :  { %p152_p1 = pnand %p150_p0, %p147_p13 }
 0x166   :  { %155 = shalt.err (!%p152_p1)
}
 0x167   :  { %95 = dma.vmem_to_hbm [thread:$0]  %s93_s27, 16, %s216_s3, [#allocation4]  }
 0x168   :  { %158 = dma.done.wait [#allocation4], 16  }
 0x169   :  { %159 = vsyncadd [#allocation4], 4294967280 }
 0x16a   :  { %99 = vsyncpa [#allocation3], 1 }
 0x16b   :  { %100 = vsyncpa [#allocation4], 1 }

</bundles_post_ra>
